<compile_context>
chip_gen: v7x
topology: tpu7x:2x2x1
jax: 0.10.0
libtpu: 0.0.40
codegen_flags: <defaults>
</compile_context>

<pallas_src>
import jax
import jax.numpy as jnp
from jax import lax
from jax.experimental import pallas as pl
from jax.experimental.pallas import tpu as pltpu


def _attention_vertical_kernel(v_ref, qh_ref, wv_ref, bv_ref, wl_ref, o_ref):
    # v_ref : (TB, 36, Dv)   per-step batch tile, Dv on lanes
    # qh_ref: (TB, 1, 64)    precomputed relu(q @ Wq + bq), row layout
    # wv_ref: (64, 36)  Wv^T     bv_ref: (64, 1)
    # wl_ref: (64, 64)  Wl^T     (lin bias is a softmax no-op -> omitted)
    # o_ref : (TB, 64, Dv)   lane-dense output
    wv_t = wv_ref[...]
    bv = bv_ref[...]
    wl_f32 = wl_ref[...].astype(jnp.float32)      # tiny (64,64) cast, hoisted
    tb = v_ref.shape[0]

    def body(b, carry):
        v_b = v_ref[b]                            # (36, Dv)

        # lin_v: relu(Wv^T @ v + bv) -> (64, Dv)   [MXU: M=64, K=36, N=Dv]
        vh = jnp.dot(wv_t, v_b, preferred_element_type=jnp.float32) + bv
        vh = jnp.maximum(vh, 0.0)

        # qh gate folded into Wl:  (Wl^T ⊙ qh_row) @ vh == Wl^T @ (vh ⊙ qh_col)
        wl_eff = wl_f32 * qh_ref[b]               # (64, 64) * (1, 64) -> (64, 64)

        # lin (bias dropped: constant along the softmax axis)
        x = jnp.dot(wl_eff, vh, preferred_element_type=jnp.float32)   # (64, Dv)

        # softmax over the Dv (lane) axis == PyTorch softmax(dim=1) of (B, Dv, 64)
        m = jnp.max(x, axis=-1, keepdims=True)    # (64, 1)  XLU
        e = jnp.exp(x - m)                        # (64, Dv) EUP
        s = jnp.sum(e, axis=-1, keepdims=True)    # (64, 1)  XLU
        o_ref[b] = (e * pl.reciprocal(s, approx=True)).astype(o_ref.dtype)
        return carry

    unroll = 2 if (tb >= 2 and tb % 2 == 0) else 1
    lax.fori_loop(0, tb, body, None, unroll=unroll)


def attention_vertical_lane_dense(v, q, params, *, tb=None,
                                  use_bf16_inputs=False,
                                  out_dtype=jnp.float32,
                                  vmem_limit_bytes=None):
    """v: (B, 36, Dv), q: (B, 1024) -> (B, 64, Dv) lane-dense output.

    Softmax is over the last (Dv) axis, matching softmax over dim=1 of the
    module's (B, Dv, 64) layout.  Prefer this layout downstream.
    """
    B, num_obj, Dv = v.shape
    assert num_obj == 36 and q.shape == (B, 1024)

    # Hoisted lin_q: one well-shaped (B,1024)@(1024,64) matmul outside the kernel.
    qh = jax.nn.relu(q.astype(jnp.float32) @ params["wq"] + params["bq"])   # (B, 64)
    qh_row = qh[:, None, :]                                                 # (B, 1, 64)

    wv_t = params["wv"].T.astype(jnp.float32)     # (64, 36)
    wl_t = params["wl"].T.astype(jnp.float32)     # (64, 64)
    bv_col = params["bv"].reshape(64, 1).astype(jnp.float32)
    # params["bl"] intentionally NOT passed: constant along softmax axis -> no-op.

    v_in = v
    if use_bf16_inputs:
        v_in = v.astype(jnp.bfloat16)
        wv_t = wv_t.astype(jnp.bfloat16)
        wl_t = wl_t.astype(jnp.bfloat16)

    # Batch tile: target ~8 MiB of (v + out) bytes per grid step so the
    # ~0.35us per-step pipeline overhead is amortized (tb≈8 at Dv=2048 f32,
    # tb≈64 at Dv=256).  Pad B up to a multiple of tb instead of shrinking tb.
    if tb is None:
        per_elem = (36 * jnp.dtype(v_in.dtype).itemsize
                    + 64 * jnp.dtype(out_dtype).itemsize) * Dv
        tb = 1
        while tb < 64 and (2 * tb) * per_elem <= (8 << 20):
            tb *= 2
    tb = max(1, min(int(tb), B))
    B_pad = ((B + tb - 1) // tb) * tb
    if B_pad != B:
        pad = B_pad - B
        v_in = jnp.pad(v_in, ((0, pad), (0, 0), (0, 0)))
        qh_row = jnp.pad(qh_row, ((0, pad), (0, 0), (0, 0)))

    grid_spec = pltpu.PrefetchScalarGridSpec(
        num_scalar_prefetch=0,
        grid=(B_pad // tb,),
        in_specs=[
            pl.BlockSpec((tb, 36, Dv), lambda i: (i, 0, 0)),   # v batch tile
            pl.BlockSpec((tb, 1, 64),  lambda i: (i, 0, 0)),   # qh rows (tiny)
            pl.BlockSpec((64, 36),     lambda i: (0, 0)),      # Wv^T (VMEM-resident)
            pl.BlockSpec((64, 1),      lambda i: (0, 0)),      # bv
            pl.BlockSpec((64, 64),     lambda i: (0, 0)),      # Wl^T
        ],
        out_specs=pl.BlockSpec((tb, 64, Dv), lambda i: (i, 0, 0)),
    )

    out = pl.pallas_call(
        _attention_vertical_kernel,
        out_shape=jax.ShapeDtypeStruct((B_pad, 64, Dv), out_dtype),
        grid_spec=grid_spec,
        compiler_params=pltpu.CompilerParams(
            dimension_semantics=("parallel",),
            vmem_limit_bytes=vmem_limit_bytes),
    )(v_in, qh_row, wv_t, bv_col, wl_t)

    return out[:B] if B_pad != B else out


def attention_vertical(v, q, params, **kwargs):
    """Drop-in semantic parity with the PyTorch module: returns (B, Dv, 64).

    NOTE: the trailing transpose is an extra HBM read+write of the whole output;
    use attention_vertical_lane_dense() on the hot path instead.
    """
    out_t = attention_vertical_lane_dense(v, q, params, **kwargs)   # (B, 64, Dv)
    return jnp.transpose(out_t, (0, 2, 1))                          # (B, Dv, 64)


def attention_vertical_ref(v, q, params):
    """Pure-JAX reference (matches the PyTorch forward, including bl)."""
    v_t = jnp.transpose(v, (0, 2, 1))                                  # (B, Dv, 36)
    vh = jax.nn.relu(jnp.einsum("bdk,ko->bdo", v_t, params["wv"]) + params["bv"])
    qh = jax.nn.relu(q @ params["wq"] + params["bq"])                  # (B, 64)
    x = vh * qh[:, None, :]
    x = jnp.einsum("bdk,ko->bdo", x, params["wl"]) + params["bl"]
    return jax.nn.softmax(x, axis=1)


def init_params(key):
    ks = jax.random.split(key, 6)
    def lin(kw, kb, fan_in, fan_out):
        bound = 1.0 / jnp.sqrt(fan_in)
        w = jax.random.uniform(kw, (fan_in, fan_out), jnp.float32, -bound, bound)
        b = jax.random.uniform(kb, (fan_out,), jnp.float32, -bound, bound)
        return w, b
    wv, bv = lin(ks[0], ks[1], 36, 64)
    wq, bq = lin(ks[2], ks[3], 1024, 64)
    wl, bl = lin(ks[4], ks[5], 64, 64)
    return {"wv": wv, "bv": bv, "wq": wq, "bq": bq, "wl": wl, "bl": bl}


if __name__ == "__main__":
    key = jax.random.PRNGKey(0)
    k_v, k_q, k_p = jax.random.split(key, 3)

    # Small test shapes (module spec: num_obj=36, Dq=1024; Dv shrunk from 2048).
    # B=5 is deliberately awkward to exercise the pad-to-multiple-of-tb path.
    B, num_obj, Dv, Dq = 5, 36, 256, 1024
    v = jax.random.normal(k_v, (B, num_obj, Dv), jnp.float32)
    q = jax.random.normal(k_q, (B, Dq), jnp.float32)
    params = init_params(k_p)

    ref = attention_vertical_ref(v, q, params)                       # (B, Dv, 64)
    ref_t = jnp.transpose(ref, (0, 2, 1))                            # (B, 64, Dv)

    # f32 path, explicit tb=2 -> B padded 5->6, 3 grid steps.
    out = jax.block_until_ready(attention_vertical(v, q, params, tb=2))
    assert out.shape == (B, Dv, 64)
    # softmax over axis 1 -> columns sum to ~1 (approx reciprocal => small slack)
    assert jnp.allclose(jnp.sum(out, axis=1), 1.0, atol=5e-3)
    assert jnp.allclose(out, ref, atol=2e-3, rtol=2e-3)

    # Lane-dense (preferred) output layout with the auto batch tile.
    out_t = jax.block_until_ready(attention_vertical_lane_dense(v, q, params))
    assert out_t.shape == (B, 64, Dv)
    assert jnp.allclose(out_t, ref_t, atol=2e-3, rtol=2e-3)

    # bf16 inputs + bf16 output (v6e/v7x oriented); softmax math stays f32.
    out_bf = jax.block_until_ready(
        attention_vertical_lane_dense(v, q, params, tb=2,
                                      use_bf16_inputs=True,
                                      out_dtype=jnp.bfloat16))
    assert out_bf.shape == (B, 64, Dv) and out_bf.dtype == jnp.bfloat16
    out_bf = out_bf.astype(jnp.float32)
    assert jnp.allclose(jnp.sum(out_bf, axis=-1), 1.0, atol=1e-2)
    assert jnp.allclose(out_bf, ref_t, atol=3e-3, rtol=5e-2)

    print("KERNEL_OK")
</pallas_src>

<mosaic_0001>
module attributes {stable_mosaic.version = 11 : i64} {
  func.func @_attention_vertical_kernel(%arg0: i32, %arg1: memref<2x36x256xf32, #tpu.memory_space<vmem>>, %arg2: memref<2x1x64xf32, #tpu.memory_space<vmem>>, %arg3: memref<64x36xf32, #tpu.memory_space<vmem>>, %arg4: memref<64x1xf32, #tpu.memory_space<vmem>>, %arg5: memref<64x64xf32, #tpu.memory_space<vmem>>, %arg6: memref<2x64x256xf32, #tpu.memory_space<vmem>>) attributes {dimension_semantics = [#tpu.dimension_semantics<parallel>], iteration_bounds = array<i64: 3>, scalar_prefetch = 0 : i64, scratch_operands = 0 : i64, tpu.core_type = #tpu.core_type<tc>, window_params = [{transform_indices = @transform_0, window_bounds = array<i64: 2, 36, 256>}, {transform_indices = @transform_1, window_bounds = array<i64: 2, 1, 64>}, {pipeline_mode = #tpu.pipeline_mode<synchronous>, transform_indices = @transform_2, window_bounds = array<i64: 64, 36>}, {pipeline_mode = #tpu.pipeline_mode<synchronous>, transform_indices = @transform_3, window_bounds = array<i64: 64, 1>}, {pipeline_mode = #tpu.pipeline_mode<synchronous>, transform_indices = @transform_4, window_bounds = array<i64: 64, 64>}, {transform_indices = @transform_5, window_bounds = array<i64: 2, 64, 256>}]} {
    %c0 = arith.constant 0 : index
    %c0_0 = arith.constant 0 : index
    %0 = vector.load %arg3[%c0, %c0_0] : memref<64x36xf32, #tpu.memory_space<vmem>>, vector<64x36xf32>
    %c0_1 = arith.constant 0 : index
    %c0_2 = arith.constant 0 : index
    %1 = vector.load %arg4[%c0_1, %c0_2] : memref<64x1xf32, #tpu.memory_space<vmem>>, vector<64x1xf32>
    %c0_3 = arith.constant 0 : index
    %c0_4 = arith.constant 0 : index
    %2 = vector.load %arg5[%c0_3, %c0_4] : memref<64x64xf32, #tpu.memory_space<vmem>>, vector<64x64xf32>
    %c0_i32 = arith.constant 0 : i32
    %3 = arith.index_cast %c0_i32 : i32 to index
    %c0_5 = arith.constant 0 : index
    %c0_6 = arith.constant 0 : index
    %4 = vector.load %arg1[%3, %c0_5, %c0_6] : memref<2x36x256xf32, #tpu.memory_space<vmem>>, vector<1x36x256xf32>
    %5 = vector.shape_cast %4 : vector<1x36x256xf32> to vector<36x256xf32>
    %cst = arith.constant dense<0.000000e+00> : vector<64x256xf32>
    %6 = tpu.matmul %0, %5, %cst {dimension_numbers = #tpu.dot_dimension_numbers<[1], [0], [0], [1], [0, 0, 1, 1], [], []>} : vector<64x36xf32>, vector<36x256xf32>, vector<64x256xf32> -> vector<64x256xf32>
    %7 = vector.broadcast %1 : vector<64x1xf32> to vector<64x256xf32>
    %8 = arith.addf %6, %7 : vector<64x256xf32>
    %cst_7 = arith.constant 0.000000e+00 : f32
    %9 = vector.broadcast %cst_7 : f32 to vector<64x256xf32>
    %10 = arith.maximumf %8, %9 : vector<64x256xf32>
    %11 = arith.index_cast %c0_i32 : i32 to index
    %c0_8 = arith.constant 0 : index
    %c0_9 = arith.constant 0 : index
    %12 = vector.load %arg2[%11, %c0_8, %c0_9] : memref<2x1x64xf32, #tpu.memory_space<vmem>>, vector<1x1x64xf32>
    %13 = vector.shape_cast %12 : vector<1x1x64xf32> to vector<1x64xf32>
    %14 = vector.broadcast %13 : vector<1x64xf32> to vector<64x64xf32>
    %15 = arith.mulf %2, %14 : vector<64x64xf32>
    %cst_10 = arith.constant dense<0.000000e+00> : vector<64x256xf32>
    %16 = tpu.matmul %15, %10, %cst_10 {dimension_numbers = #tpu.dot_dimension_numbers<[1], [0], [0], [1], [0, 0, 1, 1], [], []>} : vector<64x64xf32>, vector<64x256xf32>, vector<64x256xf32> -> vector<64x256xf32>
    %cst_11 = arith.constant dense<0xFF800000> : vector<64xf32>
    %17 = vector.multi_reduction <maximumf>, %16, %cst_11 [1] : vector<64x256xf32> to vector<64xf32>
    %18 = vector.shape_cast %17 : vector<64xf32> to vector<64x1xf32>
    %19 = vector.broadcast %18 : vector<64x1xf32> to vector<64x256xf32>
    %20 = arith.subf %16, %19 : vector<64x256xf32>
    %21 = math.exp %20 : vector<64x256xf32>
    %cst_12 = arith.constant dense<0.000000e+00> : vector<64xf32>
    %22 = vector.multi_reduction <add>, %21, %cst_12 [1] : vector<64x256xf32> to vector<64xf32>
    %23 = vector.shape_cast %22 : vector<64xf32> to vector<64x1xf32>
    %24 = tpu.reciprocal %23 {approx = true} : vector<64x1xf32> -> vector<64x1xf32>
    %25 = vector.broadcast %24 : vector<64x1xf32> to vector<64x256xf32>
    %26 = arith.mulf %21, %25 : vector<64x256xf32>
    %27 = arith.index_cast %c0_i32 : i32 to index
    %c0_13 = arith.constant 0 : index
    %c0_14 = arith.constant 0 : index
    %28 = vector.load %arg6[%27, %c0_13, %c0_14] : memref<2x64x256xf32, #tpu.memory_space<vmem>>, vector<1x64x256xf32>
    %29 = vector.shape_cast %28 : vector<1x64x256xf32> to vector<64x256xf32>
    %30 = vector.shape_cast %26 : vector<64x256xf32> to vector<1x64x256xf32>
    tpu.vector_store %arg6[%27, %c0_13, %c0_14], %30 {strides = array<i32>} : memref<2x64x256xf32, #tpu.memory_space<vmem>>, vector<1x64x256xf32>,
    %c1_i32 = arith.constant 1 : i32
    %31 = arith.index_cast %c1_i32 : i32 to index
    %c0_15 = arith.constant 0 : index
    %c0_16 = arith.constant 0 : index
    %32 = vector.load %arg1[%31, %c0_15, %c0_16] : memref<2x36x256xf32, #tpu.memory_space<vmem>>, vector<1x36x256xf32>
    %33 = vector.shape_cast %32 : vector<1x36x256xf32> to vector<36x256xf32>
    %cst_17 = arith.constant dense<0.000000e+00> : vector<64x256xf32>
    %34 = tpu.matmul %0, %33, %cst_17 {dimension_numbers = #tpu.dot_dimension_numbers<[1], [0], [0], [1], [0, 0, 1, 1], [], []>} : vector<64x36xf32>, vector<36x256xf32>, vector<64x256xf32> -> vector<64x256xf32>
    %35 = vector.broadcast %1 : vector<64x1xf32> to vector<64x256xf32>
    %36 = arith.addf %34, %35 : vector<64x256xf32>
    %cst_18 = arith.constant 0.000000e+00 : f32
    %37 = vector.broadcast %cst_18 : f32 to vector<64x256xf32>
    %38 = arith.maximumf %36, %37 : vector<64x256xf32>
    %39 = arith.index_cast %c1_i32 : i32 to index
    %c0_19 = arith.constant 0 : index
    %c0_20 = arith.constant 0 : index
    %40 = vector.load %arg2[%39, %c0_19, %c0_20] : memref<2x1x64xf32, #tpu.memory_space<vmem>>, vector<1x1x64xf32>
    %41 = vector.shape_cast %40 : vector<1x1x64xf32> to vector<1x64xf32>
    %42 = vector.broadcast %41 : vector<1x64xf32> to vector<64x64xf32>
    %43 = arith.mulf %2, %42 : vector<64x64xf32>
    %cst_21 = arith.constant dense<0.000000e+00> : vector<64x256xf32>
    %44 = tpu.matmul %43, %38, %cst_21 {dimension_numbers = #tpu.dot_dimension_numbers<[1], [0], [0], [1], [0, 0, 1, 1], [], []>} : vector<64x64xf32>, vector<64x256xf32>, vector<64x256xf32> -> vector<64x256xf32>
    %cst_22 = arith.constant dense<0xFF800000> : vector<64xf32>
    %45 = vector.multi_reduction <maximumf>, %44, %cst_22 [1] : vector<64x256xf32> to vector<64xf32>
    %46 = vector.shape_cast %45 : vector<64xf32> to vector<64x1xf32>
    %47 = vector.broadcast %46 : vector<64x1xf32> to vector<64x256xf32>
    %48 = arith.subf %44, %47 : vector<64x256xf32>
    %49 = math.exp %48 : vector<64x256xf32>
    %cst_23 = arith.constant dense<0.000000e+00> : vector<64xf32>
    %50 = vector.multi_reduction <add>, %49, %cst_23 [1] : vector<64x256xf32> to vector<64xf32>
    %51 = vector.shape_cast %50 : vector<64xf32> to vector<64x1xf32>
    %52 = tpu.reciprocal %51 {approx = true} : vector<64x1xf32> -> vector<64x1xf32>
    %53 = vector.broadcast %52 : vector<64x1xf32> to vector<64x256xf32>
    %54 = arith.mulf %49, %53 : vector<64x256xf32>
    %55 = arith.index_cast %c1_i32 : i32 to index
    %c0_24 = arith.constant 0 : index
    %c0_25 = arith.constant 0 : index
    %56 = vector.load %arg6[%55, %c0_24, %c0_25] : memref<2x64x256xf32, #tpu.memory_space<vmem>>, vector<1x64x256xf32>
    %57 = vector.shape_cast %56 : vector<1x64x256xf32> to vector<64x256xf32>
    %58 = vector.shape_cast %54 : vector<64x256xf32> to vector<1x64x256xf32>
    tpu.vector_store %arg6[%55, %c0_24, %c0_25], %58 {strides = array<i32>} : memref<2x64x256xf32, #tpu.memory_space<vmem>>, vector<1x64x256xf32>,
    %c2_i32 = arith.constant 2 : i32
    return
  }
  func.func @transform_0(%arg0: i32) -> (i32, i32, i32) {
    %c0_i32 = arith.constant 0 : i32
    %c0_i32_0 = arith.constant 0 : i32
    %c0_i32_1 = arith.constant 0 : i32
    return %arg0, %c0_i32, %c0_i32_0 : i32, i32, i32
  }
  func.func @transform_1(%arg0: i32) -> (i32, i32, i32) {
    %c0_i32 = arith.constant 0 : i32
    %c0_i32_0 = arith.constant 0 : i32
    %c0_i32_1 = arith.constant 0 : i32
    return %arg0, %c0_i32, %c0_i32_0 : i32, i32, i32
  }
  func.func @transform_2(%arg0: i32) -> (i32, i32) {
    %c0_i32 = arith.constant 0 : i32
    %c0_i32_0 = arith.constant 0 : i32
    %c0_i32_1 = arith.constant 0 : i32
    return %c0_i32, %c0_i32_0 : i32, i32
  }
  func.func @transform_3(%arg0: i32) -> (i32, i32) {
    %c0_i32 = arith.constant 0 : i32
    %c0_i32_0 = arith.constant 0 : i32
    %c0_i32_1 = arith.constant 0 : i32
    return %c0_i32, %c0_i32_0 : i32, i32
  }
  func.func @transform_4(%arg0: i32) -> (i32, i32) {
    %c0_i32 = arith.constant 0 : i32
    %c0_i32_0 = arith.constant 0 : i32
    %c0_i32_1 = arith.constant 0 : i32
    return %c0_i32, %c0_i32_0 : i32, i32
  }
  func.func @transform_5(%arg0: i32) -> (i32, i32, i32) {
    %c0_i32 = arith.constant 0 : i32
    %c0_i32_0 = arith.constant 0 : i32
    %c0_i32_1 = arith.constant 0 : i32
    return %arg0, %c0_i32, %c0_i32_0 : i32, i32, i32
  }
}

</mosaic_0001>

<bundles_post_ra>
// kernel: tpu_custom_call.1
= control target key start
LH: loop header
LB: loop body
LE: loop exit
PB: predicated region body
PF: predicated region fallthrough
CT: control target
= control target key end

     0   :  { %10 = vsyncpa [#allocation3], 0  ;;  %s2435_s0 = inlined_call_operand.hbm [shape: f32[6,36,256], index: 0, kind: input, shape index: {}]   ;;  %s2436_s1 = inlined_call_operand.vmem [shape: f32[6,1,64], index: 1, kind: input, shape index: {}]   ;;  %s2437_s2 = inlined_call_operand.vmem [shape: f32[64,36], index: 2, kind: input, shape index: {}]   ;;  %s2438_s3 = inlined_call_operand.vmem [shape: f32[64,1], index: 3, kind: input, shape index: {}]   ;;  %s2439_s4 = inlined_call_operand.vmem [shape: f32[64,64], index: 4, kind: input, shape index: {}]   ;;  %s2440_s5 = inlined_call_operand.hbm [shape: f32[6,64,256], index: 5, kind: output, shape index: {}]  }
   0x1   :  { %12 = vsyncpa [#allocation3 + $0x1], 0 }
   0x2   :  { %13 = vsyncpa [#allocation4], 0 }
   0x3   :  { %15 = vsyncpa [#allocation4 + $0x1], 0  ;;  %s1741_s18 = smov 0   ;;  %s1743_s19 = smov 0  }
   0x4   :  { %s1745_s20 = smov 0   ;;  %s1747_s21 = smov 0  }
   0x5 LB: > { %s1762_s22 = sadd.s32 4294967295, %s1701_s21   ;;  %s1322_s23 = sadd.s32 4294967294, %s1701_s21   ;;  %s1701_s21 = sphi %s1747_s21, %s2451_s21   ;;  %s1697_s20 = sphi %s1745_s20, %s2450_s20   ;;  %s1693_s19 = sphi %s1743_s19, %s2449_s19   ;;  %s1689_s18 = sphi %s1741_s18, %s2448_s18  }
   0x6   : > { %s1766_s24 = sadd.s32 1, %s1701_s21   ;;  %s28_s25 = sadd.s32 1, %s1697_s20 }
   0x7   : > { %s25_s26 = ssub.s32 %s1701_s21, %s1766_s24  ;;  %p35_p0 = scmp.ne.s32.totalorder %s1697_s20, %s1693_s19 }
   0x8   : > { %p26_p1 = scmp.eq.s32.totalorder %s25_s26, 0  ;;  %p36_p2 = scmp.eq.s32.totalorder %s1701_s21, 0 }
   0x9   : > { %p41_p3 = scmp.ne.s32.totalorder %s1693_s19, %s1689_s18  ;;  %p42_p4 = scmp.eq.s32.totalorder %s1762_s22, 0 }
   0xa   : > { %s1778_s27 = scalar_select %p26_p1, %s1697_s20, %s28_s25  }
   0xb   : > { %p37_p5 = por %p36_p2, %p35_p0  ;;  %p1780_p6 = por %p42_p4, %p41_p3 }
   0xc   : > { %p154_p7 = scmp.eq.s32.totalorder %s1762_s22, 2  ;;  %p160_p8 = scmp.eq.s32.totalorder %s1322_s23, 2 }
   0xd   : > { %p1467_p9 = scmp.lt.s32.totalorder %s1701_s21, 3  ;;  %s189_s6 = sand.u32 1, %s1697_s20  }
   0xe   : > { %p1786_p10 = por %p154_p7, %p35_p0  ;;  %p1790_p11 = por %p160_p8, %p41_p3 }
   0xf   : > { %s1453_s7 = smul.u32 2560, %s1701_s21  ;;  %p1801_p12 = pnand %p1467_p9, %p37_p5 }
  0x10   : > { %s2443_s29 = scalar_select %p1786_p10, 1, 0 }
  0x11   : > { %s2444_s30 = scalar_select %p1790_p11, 1, 0 }
  0x12   : > { %s1452_s8 = smul.u32 160, %s189_s6  ;;  %s1799_s11 = scalar_lea.hbm %s2435_s0, %s1453_s7 }
  0x13   : > { %s1807_s15 = scalar_lea.sflag [#allocation3], %s189_s6  ;;  %s1605_s16 = scalar_lea.hbm %s1799_s11, 2560 }
  0x14   : > { %s193_s13 = scalar_lea.vmem [#allocation2], %s1452_s8  ;;  %p1606_p13 = scmp.ne.s32.totalorder %s1799_s11, %s1605_s16 }
  0x15   : > { %s201_s14 = sshll.u32 %s193_s13, 4  ;;  %p1607_p0 = pneg %p1801_p12  ;;  %s1805_s14 = int_to_ptr.vmem [resolvable:$true] %s201_s14 }
  0x16   : > { %s1610_s25 = scalar_lea.hbm %s2435_s0, 7680  ;;  %p1611_p3 = scmp.lt.u32.totalorder %s1799_s11, %s2435_s0 }
  0x17   : > { %p1608_p1 = pnand %p1607_p0, %p1606_p13  ;;  %p1612_p4 = scmp.lt.u32.totalorder %s1610_s25, %s1605_s16 }
  0x18   : > { %p1614_p7 = scmp.lt.u32.totalorder %s1605_s16, %s1799_s11 }
  0x19   : > { %p1609_p2 = pneg %p1608_p1  ;;  %p1613_p5 = por %p1612_p4, %p1611_p3 }
  0x1b   : > { %p1615_p8 = por %p1614_p7, %p1613_p5 }
  0x1d   : > { %p1616_p9 = pnand %p1615_p8, %p1609_p2 }
  0x1f   : > { %1619 = shalt.err (!%p1616_p9)
}
  0x20   : > { %s1620_s6 = scalar_lea.vmem %s1805_s14, 2560  ;;  %s1703_s8 = smov [#allocation2]  }
  0x21   : > { %p1621_p13 = scmp.ne.s32.totalorder %s1805_s14, %s1620_s6  ;;  %s1625_s9 = sshll.u32 %s1703_s8, 4  ;;  %s1626_s9 = int_to_ptr.vmem [resolvable:$false] %s1625_s9 }
  0x22   : > { %s1627_s10 = scalar_lea.vmem %s1626_s9, 5120  ;;  %p1628_p10 = scmp.lt.s32.totalorder %s1805_s14, %s1626_s9 }
  0x23   : > { %p1623_p1 = pnand %p1621_p13, %p1607_p0  ;;  %p1629_p3 = scmp.lt.s32.totalorder %s1627_s10, %s1620_s6 }
  0x25   : > { %p1624_p11 = pneg %p1623_p1  ;;  %p1630_p4 = por %p1629_p3, %p1628_p10 }
  0x27   : > { %p1631_p5 = pnand %p1630_p4, %p1624_p11 }
  0x29   : > { %1634 = shalt.err (!%p1631_p5)
}
  0x2a   : > { %s1704_s13 = smov 256   ;;  %s1705_s16 = smov 16  }
  0x2b   : > { %1462 = dma.hbm_to_vmem [thread:$0]  (!%p1801_p12), %s1799_s11, 2560, %s1805_s14, %s1807_s15, %s1704_s13, %s1704_s13, %s1705_s16  }
  0x2c   : > { %p1328_p0 = scmp.ge.s32.totalorder %s1701_s21, 1  ;;  %p217_p2 = scmp.lt.s32.totalorder %s1701_s21, 4 }
  0x2e   : > { %p218_p7 = pnand %p1328_p0, %p217_p2 }
  0x2f   : > { %s1838_s17 = sand.u32 (!%p218_p7), 1, %s1693_s19  }
  0x30   : > { %221 = sbr.rel (%p218_p7) target bundleno = 925 (0x39d), region = 40  ;;  %s224_s25 = scalar_lea.sflag (!%p218_p7), [#allocation3], %s1838_s17 }
  0x31   : > { %s1454_s23 = smul.u32 (!%p218_p7), 160, %s1838_s17 }
  0x33   : > { %s1842_s26 = scalar_lea.vmem (!%p218_p7), [#allocation2], %s1454_s23 }
  0x37   : > { %1680 = dma.done.wait (%p1780_p6), %s224_s25, 2560  }
  0x38   : > { %1682 = vsyncadd (%p1780_p6), %s224_s25, 4294964736  ;;  %v1706_v0 = vmov 0.0   ;;  %v1707_v1 = vmov 0   ;;  %v290_v2 = vld [vmem:[%s1842_s26 + $0x8] sm:$0xff]  ;;  %v292_v3 = vld [vmem:[%s1842_s26 + $0x18] sm:$0xff]  ;;  %vm364_vm0 = vcmask 1043456  }
  0x39   : > { %435 = vmatprep.mubr.f32.mxu0 %v1706_v0  ;;  %1507 = vset.pattern.permute.xlu0 %v1707_v1  ;;  %v289_v4 = vld [vmem:[%s1842_s26] sm:$0xff]  ;;  %v1404_v5 = vpack.c.bf16 %v292_v3, %v290_v2  ;;  %v291_v6 = vld [vmem:[%s1842_s26 + $0x10] sm:$0xff]  ;;  %v294_v7 = vld [vmem:[%s1842_s26 + $0x28] sm:$0xff]  ;;  %vm339_vm1 = vcmask 293888   ;;  %s1330_s14 = sshll.u32 %s1762_s22, 1  ;;  %vm515_vm2 = vcmask 523264  }
  0x3a   : > { %1508 = vset.pattern.permute.xlu1 %v1707_v1  ;;  %604 = vmatprep.mubr.f32.mxu1 %v1706_v0  ;;  %v296_v8 = vld [vmem:[%s1842_s26 + $0x38] sm:$0xff]  ;;  %v1406_v9 = vpack.c.bf16 %v291_v6, %v289_v4  ;;  %v293_v11 = vld [vmem:[%s1842_s26 + $0x20] sm:$0xff]  ;;  %v295_v12 = vld [vmem:[%s1842_s26 + $0x30] sm:$0xff]  ;;  %p260_p6 = scmp.lt.s32.totalorder %s1330_s14, 5  ;;  %p2446_p11 = scmp.ne.s32.totalorder %s2443_s29, 0 }
  0x3b   : > { %v1408_v10 = vpack.c.bf16 %v296_v8, %v294_v7  ;;  %1405 = vmatprep.subr.bf16.mxu0 %v1404_v5  ;;  %v1410_v13 = vpack.c.bf16 %v295_v12, %v293_v11  ;;  %v298_v14 = vld [vmem:[%s1842_s26 + $0x48] sm:$0xf]  ;;  %v1351_v15 = vld [vmem:[%s1842_s26 + $0x58] sm:$0xff]  ;;  %v1350_v17 = vld [vmem:[%s1842_s26 + $0x50] sm:$0xff]  ;;  %s1708_s11 = smov [#allocation5]  }
  0x3c   : > { %1407 = vmatpush1.bf16.msra.mxu0 %v1406_v9  ;;  %v1353_v16 = vld [vmem:[%s1842_s26 + $0x68] sm:$0xff]  ;;  %v1352_v18 = vld [vmem:[%s1842_s26 + $0x60] sm:$0xff]  ;;  %v1355_v19 = vld [vmem:[%s1842_s26 + $0x78] sm:$0xff]  ;;  %s2453_s14 = smov (!%p260_p6, %s1330_s14), 5  ;;  %s1639_s12 = sshll.u32 %s1708_s11, 4  ;;  %s1640_s12 = int_to_ptr.vmem [resolvable:$false] %s1639_s12 }
  0x3d   : > { %1409 = vmatprep.subr.bf16.mxu0 %v1408_v10  ;;  %v1357_v20 = vld [vmem:[%s1842_s26 + $0x88] sm:$0xff]  ;;  %v297_v21 = vld [vmem:[%s1842_s26 + $0x40] sm:$0xf]  ;;  %v1428_v22 = vpack.c.bf16 %v1353_v16, %v1351_v15  ;;  %v1430_v25 = vpack.c.bf16 %v1352_v18, %v1350_v17  ;;  %v275_v26 = vld [vmem:[%s2438_s3 + $0x10] sm:$0xff]  ;;  %s1989_s6 = scalar_lea.vmem %s2436_s1, %s2453_s14  ;;  %s1641_s14 = scalar_lea.vmem %s1640_s12, 8192 }
  0x3e   : > { %v273_v23 = vld [vmem:[%s2438_s3] sm:$0xff]  ;;  %v1432_v27 = vpack.c.bf16 %v1357_v20, %v1355_v19  ;;  %v1354_v28 = vld [vmem:[%s1842_s26 + $0x70] sm:$0xff]  ;;  %311 = vperm.xlu1 %1508, %v275_v26   ;;  %v274_v30 = vld [vmem:[%s2438_s3 + $0x8] sm:$0xff] }
  0x3f   : > { %v265_v24 = vld [vmem:[%s2437_s2] sm:$0xff]  ;;  %301 = vperm.xlu0 %1507, %v273_v23   ;;  %v276_v31 = vld [vmem:[%s2438_s3 + $0x18] sm:$0xff]  ;;  %v266_v32 = vld [vmem:[%s2437_s2 + $0x8] sm:$0xff] }
  0x40   : > { %1411 = vmatpush1.bf16.msra.mxu0 %v1410_v13  ;;  %v1356_v29 = vld [vmem:[%s1842_s26 + $0x80] sm:$0xff]  ;;  %v1359_v34 = vld [vmem:[%s1842_s26 + $0x98] sm:$0xf]  ;;  %v278_v36 = vld [vmem:[%s2438_s3 + $0x28] sm:$0xff] }
  0x41   : > { %1331 = vmatprep.subr.msk.mxu0 %vm364_vm0, %v298_v14  ;;  %v1434_v33 = vpack.c.bf16 %v1356_v29, %v1354_v28  ;;  %v277_v35 = vld [vmem:[%s2438_s3 + $0x20] sm:$0xff]  ;;  %v267_v37 = vld [vmem:[%s2437_s2 + $0x10] sm:$0xff]  ;;  %v280_v40 = vld [vmem:[%s2438_s3 + $0x38] sm:$0xff] }
  0x42   : > { %316 = vperm.xlu1 %1508, %v276_v31   ;;  %v1358_v38 = vld [vmem:[%s1842_s26 + $0x90] sm:$0xf]  ;;  %v268_v41 = vld [vmem:[%s2437_s2 + $0x18] sm:$0xff]  ;;  %v269_v42 = vld [vmem:[%s2437_s2 + $0x20] sm:$0xff]  ;;  %s1403_s26 = sshll.u32 %s1762_s22, 12  ;;  %s1226_s22 = scalar_lea.sflag [#allocation4], %s1838_s17 }
  0x43   : > { %306 = vperm.xlu0 %1507, %v274_v30   ;;  %v279_v39 = vld [vmem:[%s2438_s3 + $0x30] sm:$0xff]  ;;  %v270_v43 = vld [vmem:[%s2437_s2 + $0x28] sm:$0xff]  ;;  %v272_v45 = vld [vmem:[%s2437_s2 + $0x38] sm:$0xff]  ;;  %s2386_s25 = scalar_lea.hbm %s2440_s5, %s1403_s26 }
  0x44   : > { %1332 = vmatpush1.msk.msra.mxu0 %vm364_vm0, %v297_v21  ;;  %v271_v44 = vld [vmem:[%s2437_s2 + $0x30] sm:$0xff] }
  0x45   : > { %1333 = vmatmul.mubr.msk.f32.vlgmr.msra.gmra.mrb[0].mxu0 %vm339_vm1, %v265_v24  ;;  %1429 = vmatprep.subr.bf16.mxu0 %v1428_v22 }
  0x46   : > { %441 = vmatprep.mubr.f32.mxu0 %v1706_v0  ;;  %1431 = vmatpush1.bf16.msra.mxu0 %v1430_v25 }
  0x47   : > { %1433 = vmatprep.subr.bf16.mxu0 %v1432_v27  ;;  %321 = vperm.xlu0 %1507, %v277_v35  }
  0x48   : > { %326 = vperm.xlu1 %1508, %v278_v36  }
  0x49   : > { %1334 = vmatmul.mubr.msk.f32.gmra.mrb[2].mxu0 %vm339_vm1, %v266_v32 }
  0x4a   : > { %447 = vmatprep.mubr.f32.mxu0 %v1706_v0  ;;  %1435 = vmatpush1.bf16.msra.mxu0 %v1434_v33 }
  0x4b   : > { %1360 = vmatprep.subr.msk.mxu0 %vm364_vm0, %v1359_v34  ;;  %331 = vperm.xlu0 %1507, %v279_v39  }
  0x4c   : > { %336 = vperm.xlu1 %1508, %v280_v40  }
  0x4d   : > { %1335 = vmatmul.mubr.msk.f32.gmra.mrb[4].mxu0 %vm339_vm1, %v267_v37 }
  0x4e   : > { %453 = vmatprep.mubr.f32.mxu0 %v1706_v0  ;;  %1361 = vmatpush1.msk.msra.mxu0 %vm364_vm0, %v1358_v38 }
  0x51   : > { %1336 = vmatmul.mubr.msk.f32.gmra.mrb[6].mxu0 %vm339_vm1, %v268_v41 }
  0x52   : > { %459 = vmatprep.mubr.f32.mxu0 %v1706_v0 }
  0x55   : > { %1337 = vmatmul.mubr.msk.f32.gmra.mrb[8].mxu0 %vm339_vm1, %v269_v42 }
  0x56   : > { %465 = vmatprep.mubr.f32.mxu0 %v1706_v0 }
  0x59   : > { %1338 = vmatmul.mubr.msk.f32.gmra.mrb[10].mxu0 %vm339_vm1, %v270_v43 }
  0x5a   : > { %471 = vmatprep.mubr.f32.mxu0 %v1706_v0 }
  0x5d   : > { %1339 = vmatmul.mubr.msk.f32.gmra.mrb[12].mxu0 %vm339_vm1, %v271_v44 }
  0x5e   : > { %477 = vmatprep.mubr.f32.mxu0 %v1706_v0 }
  0x61   : > { %1340 = vmatmul.mubr.msk.f32.gmra.mrb[14].mxu0 %vm339_vm1, %v272_v45 }
  0x62   : > { %870 = vmatprep.mubr.f32.mxu0 %v1706_v0 }
  0x65   : > { %1362 = vmatmul.mubr.msk.f32.vlgmr.msra.gmra.mrb[16].mxu0 %vm339_vm1, %v265_v24 }
  0x66   : > { %876 = vmatprep.mubr.f32.mxu0 %v1706_v0 }
  0x69   : > { %1363 = vmatmul.mubr.msk.f32.gmra.mrb[18].mxu0 %vm339_vm1, %v266_v32 }
  0x6a   : > { %882 = vmatprep.mubr.f32.mxu0 %v1706_v0 }
  0x6d   : > { %1364 = vmatmul.mubr.msk.f32.gmra.mrb[20].mxu0 %vm339_vm1, %v267_v37 }
  0x6e   : > { %888 = vmatprep.mubr.f32.mxu0 %v1706_v0 }
  0x71   : > { %1365 = vmatmul.mubr.msk.f32.gmra.mrb[22].mxu0 %vm339_vm1, %v268_v41 }
  0x72   : > { %894 = vmatprep.mubr.f32.mxu0 %v1706_v0 }
  0x75   : > { %1366 = vmatmul.mubr.msk.f32.gmra.mrb[24].mxu0 %vm339_vm1, %v269_v42 }
  0x76   : > { %900 = vmatprep.mubr.f32.mxu0 %v1706_v0 }
  0x79   : > { %1367 = vmatmul.mubr.msk.f32.gmra.mrb[26].mxu0 %vm339_vm1, %v270_v43 }
  0x7a   : > { %906 = vmatprep.mubr.f32.mxu0 %v1706_v0 }
  0x7d   : > { %1368 = vmatmul.mubr.msk.f32.gmra.mrb[28].mxu0 %vm339_vm1, %v271_v44 }
  0x7e   : > { %912 = vmatprep.mubr.f32.mxu0 %v1706_v0 }
  0x81   : > { %1369 = vmatmul.mubr.msk.f32.gmra.mrb[30].mxu0 %vm339_vm1, %v272_v45 }
  0xbd   : > { %v1961_v56 = vpop.permute.xlu1 %311 }
  0xbe   : > { %v1953_v46 = vpop.permute.xlu0 %301 }
  0xc1   : > { %v1965_v4 = vpop.permute.xlu1 %316 }
  0xc2   : > { %v1955_v49 = vpop.permute.xlu0 %306 }
  0xc6   : > { %v1969_v16 = vpop.permute.xlu0 %321 }
  0xc7   : > { %v1973_v19 = vpop.permute.xlu1 %326 }
  0xca   : > { %v1978_v32 = vpop.permute.xlu0 %331 }
  0xcb   : > { %v1981_v35 = vpop.permute.xlu1 %336 }
 0x118   : > { %v437_v47 = vpop.f32.mrb[0].mxu0 }
 0x119   : > { %v439_v48 = vpop.f32.mrb[1].mxu0  ;;  %v438_v50 = vadd.f32 %v437_v47, %v1953_v46 }
 0x11a   : > { %v440_v51 = vadd.f32 %v439_v48, %v1953_v46 }
 0x11b   : > { %v484_v57 = vmax.f32 %v438_v50, 0.0  ;;  %v1994_v50 = vld [vmem:[%s2439_s4] sm:$0xff] }
 0x11c   : > { %v443_v52 = vpop.f32.mrb[2].mxu0  ;;  %v485_v59 = vmax.f32 %v440_v51, 0.0  ;;  %v1997_v51 = vld [vmem:[%s1989_s6] ss:$0 sm:$0xff] }
 0x11d   : > { %v444_v53 = vadd.f32 %v443_v52, %v1955_v49  ;;  %v445_v54 = vpop.f32.mrb[3].mxu0 }
 0x11e   : > { %v446_v55 = vadd.f32 %v445_v54, %v1955_v49 }
 0x11f   : > { %v486_v58 = vmax.f32 %v444_v53, 0.0 }
 0x120   : > { %v487_v60 = vmax.f32 %v446_v55, 0.0  ;;  %v449_v61 = vpop.f32.mrb[4].mxu0 }
 0x121   : > { %v451_v62 = vpop.f32.mrb[5].mxu0  ;;  %v1414_v63 = vpack.c.bf16 %v486_v58, %v484_v57  ;;  %v450_v2 = vadd.f32 %v449_v61, %v1961_v56  ;;  %v507_v57 = vmul.f32 %v1997_v51, %v1994_v50 }
 0x122   : > { %v1412_v1 = vpack.c.bf16 %v487_v60, %v485_v59  ;;  %v452_v3 = vadd.f32 %v451_v62, %v1961_v56  ;;  %v2007_v60 = vld [vmem:[%s2439_s4 + $0x8] sm:$0xff] }
 0x123   : > { %v488_v9 = vmax.f32 %v450_v2, 0.0 }
 0x124   : > { %v455_v5 = vpop.f32.mrb[6].mxu0  ;;  %1413 = vmatprep.subr.bf16.mxu1 %v1412_v1  ;;  %v489_v11 = vmax.f32 %v452_v3, 0.0  ;;  %v508_v3 = vmul.f32 %v1997_v51, %v2007_v60 }
 0x125   : > { %v456_v6 = vadd.f32 %v455_v5, %v1965_v4  ;;  %v457_v7 = vpop.f32.mrb[7].mxu0  ;;  %1415 = vmatpush1.bf16.msra.mxu1 %v1414_v63 }
 0x126   : > { %v458_v8 = vadd.f32 %v457_v7, %v1965_v4  ;;  %v2017_v7 = vld [vmem:[%s2439_s4 + $0x10] sm:$0xff] }
 0x127   : > { %v490_v10 = vmax.f32 %v456_v6, 0.0 }
 0x128   : > { %v491_v12 = vmax.f32 %v458_v8, 0.0  ;;  %v461_v13 = vpop.f32.mrb[8].mxu0 }
 0x129   : > { %v1418_v14 = vpack.c.bf16 %v490_v10, %v488_v9  ;;  %v463_v15 = vpop.f32.mrb[9].mxu0  ;;  %v462_v18 = vadd.f32 %v461_v13, %v1969_v16 }
 0x12a   : > { %v1416_v17 = vpack.c.bf16 %v491_v12, %v489_v11  ;;  %v464_v20 = vadd.f32 %v463_v15, %v1969_v16  ;;  %v509_v11 = vmul.f32 %v1997_v51, %v2017_v7 }
 0x12b   : > { %v492_v25 = vmax.f32 %v462_v18, 0.0 }
 0x12c   : > { %v467_v21 = vpop.f32.mrb[10].mxu0  ;;  %1417 = vmatprep.subr.bf16.mxu1 %v1416_v17  ;;  %v493_v27 = vmax.f32 %v464_v20, 0.0 }
 0x12d   : > { %v468_v22 = vadd.f32 %v467_v21, %v1973_v19  ;;  %v469_v23 = vpop.f32.mrb[11].mxu0  ;;  %1419 = vmatpush1.bf16.msra.mxu1 %v1418_v14  ;;  %v2029_v14 = vld [vmem:[%s2439_s4 + $0x18] sm:$0xff] }
 0x12e   : > { %v470_v24 = vadd.f32 %v469_v23, %v1973_v19 }
 0x12f   : > { %v494_v26 = vmax.f32 %v468_v22, 0.0  ;;  %v510_v22 = vmul.f32 %v1997_v51, %v2029_v14 }
 0x130   : > { %v495_v28 = vmax.f32 %v470_v24, 0.0  ;;  %v473_v29 = vpop.f32.mrb[12].mxu0 }
 0x131   : > { %v1422_v30 = vpack.c.bf16 %v494_v26, %v492_v25  ;;  %v475_v31 = vpop.f32.mrb[13].mxu0  ;;  %v474_v34 = vadd.f32 %v473_v29, %v1978_v32  ;;  %v2039_v25 = vld [vmem:[%s2439_s4 + $0x20] sm:$0xff] }
 0x132   : > { %v1420_v33 = vpack.c.bf16 %v495_v28, %v493_v27  ;;  %v476_v36 = vadd.f32 %v475_v31, %v1978_v32  ;;  %v511_v29 = vmul.f32 %v1997_v51, %v2039_v25 }
 0x133   : > { %v496_v41 = vmax.f32 %v474_v34, 0.0 }
 0x134   : > { %v479_v37 = vpop.f32.mrb[14].mxu0  ;;  %1421 = vmatprep.subr.bf16.mxu1 %v1420_v33  ;;  %v497_v43 = vmax.f32 %v476_v36, 0.0  ;;  %v286_v33 = vld [vmem:[%s2439_s4 + $0x28] sm:$0xff] }
 0x135   : > { %v480_v38 = vadd.f32 %v479_v37, %v1981_v35  ;;  %v481_v39 = vpop.f32.mrb[15].mxu0  ;;  %1423 = vmatpush1.bf16.msra.mxu1 %v1422_v30 }
 0x136   : > { %v482_v40 = vadd.f32 %v481_v39, %v1981_v35 }
 0x137   : > { %v498_v42 = vmax.f32 %v480_v38, 0.0 }
 0x138   : > { %v499_v44 = vmax.f32 %v482_v40, 0.0  ;;  %v872_v45 = vpop.f32.mrb[16].mxu0  ;;  %v512_v40 = vmul.f32 %v1997_v51, %v286_v33 }
 0x139   : > { %v1426_v47 = vpack.c.bf16 %v498_v42, %v496_v41  ;;  %v874_v48 = vpop.f32.mrb[17].mxu0  ;;  %v873_v53 = vadd.f32 %v872_v45, %v1953_v46 }
 0x13a   : > { %v1424_v52 = vpack.c.bf16 %v499_v44, %v497_v43  ;;  %v875_v54 = vadd.f32 %v874_v48, %v1953_v46  ;;  %v287_v43 = vld [vmem:[%s2439_s4 + $0x30] sm:$0xff] }
 0x13b   : > { %v919_v62 = vmax.f32 %v873_v53, 0.0  ;;  %v513_v48 = vmul.f32 %v1997_v51, %v287_v43 }
 0x13c   : > { %1425 = vmatprep.subr.bf16.mxu1 %v1424_v52  ;;  %v878_v55 = vpop.f32.mrb[18].mxu0  ;;  %v920_v46 = vmax.f32 %v875_v54, 0.0  ;;  %v288_v54 = vld [vmem:[%s2439_s4 + $0x38] sm:$0xff] }
 0x13d   : > { %v879_v58 = vadd.f32 %v878_v55, %v1955_v49  ;;  %1427 = vmatpush1.bf16.msra.mxu1 %v1426_v47  ;;  %v880_v59 = vpop.f32.mrb[19].mxu0 }
 0x13e   : > { %v881_v61 = vadd.f32 %v880_v59, %v1955_v49 }
 0x13f   : > { %v921_v63 = vmax.f32 %v879_v58, 0.0 }
 0x140   : > { %v922_v1 = vmax.f32 %v881_v61, 0.0  ;;  %1342 = vmatmul.mubr.msk.f32.vlgmr.msra.gmra.mrb[0].mxu1 %vm515_vm2, %v507_v57  ;;  %v884_v2 = vpop.f32.mrb[20].mxu0  ;;  %v514_v61 = vmul.f32 %v1997_v51, %v288_v54 }
 0x141   : > { %v1438_v5 = vpack.c.bf16 %v921_v63, %v919_v62  ;;  %v886_v6 = vpop.f32.mrb[21].mxu0  ;;  %610 = vmatprep.mubr.f32.mxu1 %v1706_v0  ;;  %v885_v8 = vadd.f32 %v884_v2, %v1961_v56  ;;  %v1371_v62 = vld [vmem:[%s1989_s6 + $0x1] ss:$0 sm:$0xff]  ;;  %s1329_s6 = sshll.u32 %s1838_s17, 8 }
 0x142   : > { %v1436_v49 = vpack.c.bf16 %v922_v1, %v920_v46  ;;  %v887_v9 = vadd.f32 %v886_v6, %v1961_v56  ;;  %v943_v1 = vmul.f32 %v1371_v62, %v1994_v50  ;;  %v945_v51 = vmul.f32 %v1371_v62, %v2017_v7  ;;  %s2321_s10 = scalar_lea.vmem [#allocation5], %s1329_s6 }
 0x143   : > { %v923_v15 = vmax.f32 %v885_v8, 0.0  ;;  %v946_v50 = vmul.f32 %v1371_v62, %v2029_v14  ;;  %v947_v2 = vmul.f32 %v1371_v62, %v2039_v25  ;;  %s1240_s13 = sshll.u32 %s2321_s10, 4  ;;  %s2388_s13 = int_to_ptr.vmem [resolvable:$true] %s1240_s13 }
 0x144   : > { %1343 = vmatmul.mubr.msk.f32.gmra.mrb[2].mxu1 %vm515_vm2, %v508_v3  ;;  %v890_v10 = vpop.f32.mrb[22].mxu0  ;;  %1437 = vmatprep.subr.bf16.mxu1 %v1436_v49  ;;  %v924_v18 = vmax.f32 %v887_v9, 0.0  ;;  %v949_v3 = vmul.f32 %v1371_v62, %v287_v43  ;;  %s1635_s28 = scalar_lea.vmem %s2388_s13, 4096  ;;  %p1642_p9 = scmp.lt.s32.totalorder %s2388_s13, %s1640_s12 }
 0x145   : > { %v891_v12 = vadd.f32 %v890_v10, %v1965_v4  ;;  %v892_v13 = vpop.f32.mrb[23].mxu0  ;;  %1439 = vmatpush1.bf16.msra.mxu1 %v1438_v5  ;;  %616 = vmatprep.mubr.f32.mxu1 %v1706_v0  ;;  %v950_v5 = vmul.f32 %v1371_v62, %v288_v54  ;;  %p1636_p10 = scmp.ne.s32.totalorder %s2388_s13, %s1635_s28  ;;  %p1643_p13 = scmp.lt.s32.totalorder %s1641_s14, %s1635_s28 }
 0x146   : > { %v893_v56 = vadd.f32 %v892_v13, %v1965_v4 }
 0x147   : > { %v925_v17 = vmax.f32 %v891_v12, 0.0  ;;  %p1637_p12 = pnand %p1636_p10, %p2446_p11  ;;  %p1644_p1 = por %p1643_p13, %p1642_p9 }
 0x148   : > { %v926_v20 = vmax.f32 %v893_v56, 0.0  ;;  %1344 = vmatmul.mubr.msk.f32.gmra.mrb[4].mxu1 %vm515_vm2, %v509_v11  ;;  %v896_v21 = vpop.f32.mrb[24].mxu0 }
 0x149   : > { %v1442_v23 = vpack.c.bf16 %v925_v17, %v923_v15  ;;  %v898_v24 = vpop.f32.mrb[25].mxu0  ;;  %622 = vmatprep.mubr.f32.mxu1 %v1706_v0  ;;  %v897_v26 = vadd.f32 %v896_v21, %v1969_v16  ;;  %p1638_p8 = pneg %p1637_p12 }
 0x14a   : > { %v1440_v4 = vpack.c.bf16 %v926_v20, %v924_v18  ;;  %v899_v27 = vadd.f32 %v898_v24, %v1969_v16 }
 0x14b   : > { %v927_v16 = vmax.f32 %v897_v26, 0.0  ;;  %p1645_p3 = pnand %p1644_p1, %p1638_p8 }
 0x14c   : > { %1345 = vmatmul.mubr.msk.f32.gmra.mrb[6].mxu1 %vm515_vm2, %v510_v22  ;;  %v902_v28 = vpop.f32.mrb[26].mxu0  ;;  %1441 = vmatprep.subr.bf16.mxu1 %v1440_v4  ;;  %v928_v37 = vmax.f32 %v899_v27, 0.0 }
 0x14d   : > { %v903_v30 = vadd.f32 %v902_v28, %v1973_v19  ;;  %v904_v31 = vpop.f32.mrb[27].mxu0  ;;  %1443 = vmatpush1.bf16.msra.mxu1 %v1442_v23  ;;  %628 = vmatprep.mubr.f32.mxu1 %v1706_v0 }
 0x14e   : > { %v905_v34 = vadd.f32 %v904_v31, %v1973_v19 }
 0x14f   : > { %v929_v36 = vmax.f32 %v903_v30, 0.0 }
 0x150   : > { %v930_v38 = vmax.f32 %v905_v34, 0.0  ;;  %1346 = vmatmul.mubr.msk.f32.gmra.mrb[8].mxu1 %vm515_vm2, %v511_v29  ;;  %v908_v39 = vpop.f32.mrb[28].mxu0 }
 0x151   : > { %v1446_v41 = vpack.c.bf16 %v929_v36, %v927_v16  ;;  %v910_v42 = vpop.f32.mrb[29].mxu0  ;;  %634 = vmatprep.mubr.f32.mxu1 %v1706_v0  ;;  %v909_v19 = vadd.f32 %v908_v39, %v1978_v32 }
 0x152   : > { %v1444_v44 = vpack.c.bf16 %v930_v38, %v928_v37  ;;  %v911_v45 = vadd.f32 %v910_v42, %v1978_v32 }
 0x153   : > { %v931_v32 = vmax.f32 %v909_v19, 0.0 }
 0x154   : > { %1347 = vmatmul.mubr.msk.f32.gmra.mrb[10].mxu1 %vm515_vm2, %v512_v40  ;;  %v914_v47 = vpop.f32.mrb[30].mxu0  ;;  %1445 = vmatprep.subr.bf16.mxu1 %v1444_v44  ;;  %v932_v58 = vmax.f32 %v911_v45, 0.0 }
 0x155   : > { %v915_v52 = vadd.f32 %v914_v47, %v1981_v35  ;;  %v916_v53 = vpop.f32.mrb[31].mxu0  ;;  %1447 = vmatpush1.bf16.msra.mxu1 %v1446_v41  ;;  %640 = vmatprep.mubr.f32.mxu1 %v1706_v0 }
 0x156   : > { %v917_v55 = vadd.f32 %v916_v53, %v1981_v35  ;;  %v944_v35 = vmul.f32 %v1371_v62, %v2007_v60  ;;  %v948_v60 = vmul.f32 %v1371_v62, %v286_v33 }
 0x157   : > { %v933_v57 = vmax.f32 %v915_v52, 0.0 }
 0x158   : > { %v934_v59 = vmax.f32 %v917_v55, 0.0  ;;  %1348 = vmatmul.mubr.msk.f32.gmra.mrb[12].mxu1 %vm515_vm2, %v513_v48 }
 0x159   : > { %v1450_v63 = vpack.c.bf16 %v933_v57, %v931_v32  ;;  %646 = vmatprep.mubr.f32.mxu1 %v1706_v0 }
 0x15a   : > { %v1448_v46 = vpack.c.bf16 %v934_v59, %v932_v58 }
 0x15c   : > { %1349 = vmatmul.mubr.msk.f32.gmra.mrb[14].mxu1 %vm515_vm2, %v514_v61  ;;  %1449 = vmatprep.subr.bf16.mxu1 %v1448_v46 }
 0x15d   : > { %1451 = vmatpush1.bf16.msra.mxu1 %v1450_v63  ;;  %1039 = vmatprep.mubr.f32.mxu1 %v1706_v0 }
 0x160   : > { %1372 = vmatmul.mubr.msk.f32.vlgmr.msra.gmra.mrb[16].mxu1 %vm515_vm2, %v943_v1 }
 0x161   : > { %1045 = vmatprep.mubr.f32.mxu1 %v1706_v0 }
 0x164   : > { %1373 = vmatmul.mubr.msk.f32.gmra.mrb[18].mxu1 %vm515_vm2, %v944_v35 }
 0x165   : > { %1051 = vmatprep.mubr.f32.mxu1 %v1706_v0 }
 0x168   : > { %1374 = vmatmul.mubr.msk.f32.gmra.mrb[20].mxu1 %vm515_vm2, %v945_v51 }
 0x169   : > { %1057 = vmatprep.mubr.f32.mxu1 %v1706_v0 }
 0x16c   : > { %1375 = vmatmul.mubr.msk.f32.gmra.mrb[22].mxu1 %vm515_vm2, %v946_v50 }
 0x16d   : > { %1063 = vmatprep.mubr.f32.mxu1 %v1706_v0 }
 0x170   : > { %1376 = vmatmul.mubr.msk.f32.gmra.mrb[24].mxu1 %vm515_vm2, %v947_v2 }
 0x171   : > { %1069 = vmatprep.mubr.f32.mxu1 %v1706_v0 }
 0x174   : > { %1377 = vmatmul.mubr.msk.f32.gmra.mrb[26].mxu1 %vm515_vm2, %v948_v60 }
 0x175   : > { %1075 = vmatprep.mubr.f32.mxu1 %v1706_v0 }
 0x178   : > { %1378 = vmatmul.mubr.msk.f32.gmra.mrb[28].mxu1 %vm515_vm2, %v949_v3 }
 0x179   : > { %1081 = vmatprep.mubr.f32.mxu1 %v1706_v0 }
 0x17c   : > { %1379 = vmatmul.mubr.msk.f32.gmra.mrb[30].mxu1 %vm515_vm2, %v950_v5 }
 0x213   : > { %v2094_v6 = vpop.f32.mrb[0].mxu1 }
 0x214   : > { %v2096_v7 = vpop.f32.mrb[1].mxu1 }
 0x215   : > { %v653_v49 = vmax.f32 %v2094_v6, %v2096_v7 }
 0x217   : > { %654 = vmax.xlane.f32.xlu0 %v653_v49  ;;  %v2100_v8 = vpop.f32.mrb[2].mxu1 }
 0x218   : > { %v2102_v9 = vpop.f32.mrb[3].mxu1 }
 0x219   : > { %v656_v10 = vmax.f32 %v2100_v8, %v2102_v9 }
 0x21b   : > { %657 = vmax.xlane.f32.xlu1 %v656_v10  ;;  %v2106_v11 = vpop.f32.mrb[4].mxu1 }
 0x21c   : > { %v2108_v0 = vpop.f32.mrb[5].mxu1 }
 0x21d   : > { %v659_v12 = vmax.f32 %v2106_v11, %v2108_v0 }
 0x21f   : > { %660 = vmax.xlane.f32.xlu0 %v659_v12  ;;  %v2112_v13 = vpop.f32.mrb[6].mxu1 }
 0x220   : > { %v2114_v14 = vpop.f32.mrb[7].mxu1 }
 0x221   : > { %v662_v56 = vmax.f32 %v2112_v13, %v2114_v14 }
 0x223   : > { %663 = vmax.xlane.f32.xlu0 %v662_v56  ;;  %v2118_v15 = vpop.f32.mrb[8].mxu1 }
 0x224   : > { %v2120_v17 = vpop.f32.mrb[9].mxu1 }
 0x225   : > { %v665_v18 = vmax.f32 %v2118_v15, %v2120_v17 }
 0x227   : > { %666 = vmax.xlane.f32.xlu1 %v665_v18  ;;  %v2124_v20 = vpop.f32.mrb[10].mxu1 }
 0x228   : > { %v2126_v21 = vpop.f32.mrb[11].mxu1 }
 0x229   : > { %v668_v22 = vmax.f32 %v2124_v20, %v2126_v21 }
 0x22b   : > { %669 = vmax.xlane.f32.xlu0 %v668_v22  ;;  %v2130_v23 = vpop.f32.mrb[12].mxu1 }
 0x22c   : > { %v2132_v24 = vpop.f32.mrb[13].mxu1 }
 0x22d   : > { %v671_v25 = vmax.f32 %v2130_v23, %v2132_v24 }
 0x22f   : > { %672 = vmax.xlane.f32.xlu1 %v671_v25  ;;  %v2136_v4 = vpop.f32.mrb[14].mxu1 }
 0x230   : > { %v2138_v26 = vpop.f32.mrb[15].mxu1 }
 0x231   : > { %v674_v27 = vmax.f32 %v2136_v4, %v2138_v26 }
 0x233   : > { %v2142_v28 = vpop.f32.mrb[16].mxu1  ;;  %675 = vmax.xlane.f32.xlu0 %v674_v27 }
 0x234   : > { %v2144_v29 = vpop.f32.mrb[17].mxu1 }
 0x235   : > { %v1088_v30 = vmax.f32 %v2142_v28, %v2144_v29 }
 0x237   : > { %1089 = vmax.xlane.f32.xlu1 %v1088_v30  ;;  %v2148_v31 = vpop.f32.mrb[18].mxu1 }
 0x238   : > { %v2150_v33 = vpop.f32.mrb[19].mxu1 }
 0x239   : > { %v1091_v34 = vmax.f32 %v2148_v31, %v2150_v33 }
 0x23b   : > { %v2154_v16 = vpop.f32.mrb[20].mxu1  ;;  %1092 = vmax.xlane.f32.xlu0 %v1091_v34 }
 0x23c   : > { %v2156_v36 = vpop.f32.mrb[21].mxu1 }
 0x23d   : > { %v1094_v37 = vmax.f32 %v2154_v16, %v2156_v36 }
 0x23f   : > { %1095 = vmax.xlane.f32.xlu1 %v1094_v37  ;;  %v2160_v38 = vpop.f32.mrb[22].mxu1 }
 0x240   : > { %v2162_v39 = vpop.f32.mrb[23].mxu1 }
 0x241   : > { %v1097_v40 = vmax.f32 %v2160_v38, %v2162_v39 }
 0x243   : > { %v2166_v41 = vpop.f32.mrb[24].mxu1  ;;  %1098 = vmax.xlane.f32.xlu0 %v1097_v40 }
 0x244   : > { %v2168_v42 = vpop.f32.mrb[25].mxu1 }
 0x245   : > { %v1100_v43 = vmax.f32 %v2166_v41, %v2168_v42 }
 0x247   : > { %1101 = vmax.xlane.f32.xlu1 %v1100_v43  ;;  %v2172_v44 = vpop.f32.mrb[26].mxu1 }
 0x248   : > { %v2174_v19 = vpop.f32.mrb[27].mxu1 }
 0x249   : > { %v1103_v45 = vmax.f32 %v2172_v44, %v2174_v19 }
 0x24b   : > { %v2178_v47 = vpop.f32.mrb[28].mxu1  ;;  %1104 = vmax.xlane.f32.xlu0 %v1103_v45 }
 0x24c   : > { %v2180_v48 = vpop.f32.mrb[29].mxu1 }
 0x24d   : > { %v1106_v52 = vmax.f32 %v2178_v47, %v2180_v48 }
 0x24f   : > { %1107 = vmax.xlane.f32.xlu1 %v1106_v52  ;;  %v2184_v53 = vpop.f32.mrb[30].mxu1 }
 0x250   : > { %v2186_v54 = vpop.f32.mrb[31].mxu1 }
 0x251   : > { %v1109_v55 = vmax.f32 %v2184_v53, %v2186_v54 }
 0x253   : > { %1110 = vmax.xlane.f32.xlu0 %v1109_v55 }
 0x2a4   : > { %v655_v32 = vpop.xlane.xlu0 %654 }
 0x2a5   : > { %v677_v57 = vsub.f32 %v2094_v6, %v655_v32  ;;  %v678_v58 = vsub.f32 %v2096_v7, %v655_v32 }
 0x2a7   : > { %v693_v59 = vmul.f32 1.442695, %v677_v57  ;;  %v695_v61 = vmul.f32 1.442695, %v678_v58 }
 0x2a8   : > { %v658_v62 = vpop.xlane.xlu1 %657 }
 0x2a9   : > { %1509 = vpow2.f32 %v693_v59  ;;  %v679_v63 = vsub.f32 %v2100_v8, %v658_v62  ;;  %v680_v46 = vsub.f32 %v2102_v9, %v658_v62 }
 0x2aa   : > { %1511 = vpow2.f32 %v695_v61 }
 0x2ab   : > { %v697_v1 = vmul.f32 1.442695, %v679_v63  ;;  %v699_v35 = vmul.f32 1.442695, %v680_v46 }
 0x2ac   : > { %v661_v51 = vpop.xlane.xlu0 %660 }
 0x2ad   : > { %1513 = vpow2.f32 %v697_v1  ;;  %v681_v50 = vsub.f32 %v2106_v11, %v661_v51  ;;  %v682_v2 = vsub.f32 %v2108_v0, %v661_v51 }
 0x2ae   : > { %1515 = vpow2.f32 %v699_v35 }
 0x2af   : > { %v701_v60 = vmul.f32 1.442695, %v681_v50  ;;  %v703_v3 = vmul.f32 1.442695, %v682_v2 }
 0x2b0   : > { %v664_v5 = vpop.xlane.xlu0 %663 }
 0x2b1   : > { %1517 = vpow2.f32 %v701_v60  ;;  %v683_v6 = vsub.f32 %v2112_v13, %v664_v5  ;;  %v684_v7 = vsub.f32 %v2114_v14, %v664_v5 }
 0x2b2   : > { %1519 = vpow2.f32 %v703_v3 }
 0x2b3   : > { %v2198_v49 = vpop.eup %1509  ;;  %v705_v8 = vmul.f32 1.442695, %v683_v6  ;;  %v707_v9 = vmul.f32 1.442695, %v684_v7 }
 0x2b4   : > { %v2200_v10 = vpop.eup %1511  ;;  %v667_v12 = vpop.xlane.xlu1 %666 }
 0x2b5   : > { %1521 = vpow2.f32 %v705_v8  ;;  %v685_v11 = vsub.f32 %v2118_v15, %v667_v12  ;;  %v686_v0 = vsub.f32 %v2120_v17, %v667_v12  ;;  %v725_v56 = vadd.f32 %v2200_v10, %v2198_v49 }
 0x2b6   : > { %1523 = vpow2.f32 %v707_v9 }
 0x2b7   : > { %v2206_v13 = vpop.eup %1513  ;;  %v709_v14 = vmul.f32 1.442695, %v685_v11  ;;  %v711_v18 = vmul.f32 1.442695, %v686_v0  ;;  %726 = vadd.xlane.f32.xlu1 %v725_v56 }
 0x2b8   : > { %v2208_v22 = vpop.eup %1515  ;;  %v670_v25 = vpop.xlane.xlu0 %669 }
 0x2b9   : > { %1525 = vpow2.f32 %v709_v14  ;;  %v687_v27 = vsub.f32 %v2124_v20, %v670_v25  ;;  %v688_v30 = vsub.f32 %v2126_v21, %v670_v25  ;;  %v728_v15 = vadd.f32 %v2208_v22, %v2206_v13 }
 0x2ba   : > { %1527 = vpow2.f32 %v711_v18 }
 0x2bb   : > { %v2214_v17 = vpop.eup %1517  ;;  %v713_v34 = vmul.f32 1.442695, %v687_v27  ;;  %v715_v37 = vmul.f32 1.442695, %v688_v30  ;;  %729 = vadd.xlane.f32.xlu0 %v728_v15 }
 0x2bc   : > { %v2216_v40 = vpop.eup %1519  ;;  %v673_v43 = vpop.xlane.xlu1 %672 }
 0x2bd   : > { %1529 = vpow2.f32 %v713_v34  ;;  %v689_v45 = vsub.f32 %v2130_v23, %v673_v43  ;;  %v690_v52 = vsub.f32 %v2132_v24, %v673_v43  ;;  %v731_v20 = vadd.f32 %v2216_v40, %v2214_v17 }
 0x2be   : > { %1531 = vpow2.f32 %v715_v37 }
 0x2bf   : > { %v2222_v21 = vpop.eup %1521  ;;  %v717_v55 = vmul.f32 1.442695, %v689_v45  ;;  %v719_v32 = vmul.f32 1.442695, %v690_v52  ;;  %732 = vadd.xlane.f32.xlu1 %v731_v20 }
 0x2c0   : > { %v2224_v57 = vpop.eup %1523  ;;  %v676_v58 = vpop.xlane.xlu0 %675 }
 0x2c1   : > { %1533 = vpow2.f32 %v717_v55  ;;  %v691_v59 = vsub.f32 %v2136_v4, %v676_v58  ;;  %v692_v61 = vsub.f32 %v2138_v26, %v676_v58  ;;  %v734_v23 = vadd.f32 %v2224_v57, %v2222_v21 }
 0x2c2   : > { %1535 = vpow2.f32 %v719_v32 }
 0x2c3   : > { %v2230_v24 = vpop.eup %1525  ;;  %v721_v62 = vmul.f32 1.442695, %v691_v59  ;;  %v723_v63 = vmul.f32 1.442695, %v692_v61  ;;  %735 = vadd.xlane.f32.xlu0 %v734_v23 }
 0x2c4   : > { %v2232_v46 = vpop.eup %1527  ;;  %v1090_v1 = vpop.xlane.xlu1 %1089 }
 0x2c5   : > { %1537 = vpow2.f32 %v721_v62  ;;  %v1112_v35 = vsub.f32 %v2142_v28, %v1090_v1  ;;  %v1113_v51 = vsub.f32 %v2144_v29, %v1090_v1  ;;  %v737_v4 = vadd.f32 %v2232_v46, %v2230_v24 }
 0x2c6   : > { %1539 = vpow2.f32 %v723_v63 }
 0x2c7   : > { %v2238_v26 = vpop.eup %1529  ;;  %v1128_v50 = vmul.f32 1.442695, %v1112_v35  ;;  %v1130_v2 = vmul.f32 1.442695, %v1113_v51  ;;  %738 = vadd.xlane.f32.xlu1 %v737_v4 }
 0x2c8   : > { %v2240_v60 = vpop.eup %1531  ;;  %v1093_v3 = vpop.xlane.xlu0 %1092 }
 0x2c9   : > { %1541 = vpow2.f32 %v1128_v50  ;;  %v1114_v5 = vsub.f32 %v2148_v31, %v1093_v3  ;;  %v1115_v6 = vsub.f32 %v2150_v33, %v1093_v3  ;;  %v740_v28 = vadd.f32 %v2240_v60, %v2238_v26 }
 0x2ca   : > { %1543 = vpow2.f32 %v1130_v2 }
 0x2cb   : > { %v2246_v29 = vpop.eup %1533  ;;  %v1132_v7 = vmul.f32 1.442695, %v1114_v5  ;;  %v1134_v8 = vmul.f32 1.442695, %v1115_v6  ;;  %741 = vadd.xlane.f32.xlu0 %v740_v28 }
 0x2cc   : > { %v2248_v9 = vpop.eup %1535  ;;  %v1096_v12 = vpop.xlane.xlu1 %1095 }
 0x2cd   : > { %1545 = vpow2.f32 %v1132_v7  ;;  %v1116_v11 = vsub.f32 %v2154_v16, %v1096_v12  ;;  %v1117_v0 = vsub.f32 %v2156_v36, %v1096_v12  ;;  %v743_v31 = vadd.f32 %v2248_v9, %v2246_v29 }
 0x2ce   : > { %1547 = vpow2.f32 %v1134_v8 }
 0x2cf   : > { %v2254_v33 = vpop.eup %1537  ;;  %v1136_v56 = vmul.f32 1.442695, %v1116_v11  ;;  %v1138_v14 = vmul.f32 1.442695, %v1117_v0  ;;  %744 = vadd.xlane.f32.xlu1 %v743_v31 }
 0x2d0   : > { %v2256_v18 = vpop.eup %1539  ;;  %v1099_v25 = vpop.xlane.xlu0 %1098 }
 0x2d1   : > { %1549 = vpow2.f32 %v1136_v56  ;;  %v1118_v27 = vsub.f32 %v2160_v38, %v1099_v25  ;;  %v1119_v30 = vsub.f32 %v2162_v39, %v1099_v25  ;;  %v746_v16 = vadd.f32 %v2256_v18, %v2254_v33 }
 0x2d2   : > { %1551 = vpow2.f32 %v1138_v14 }
 0x2d3   : > { %v2262_v36 = vpop.eup %1541  ;;  %v1140_v15 = vmul.f32 1.442695, %v1118_v27  ;;  %v1142_v34 = vmul.f32 1.442695, %v1119_v30  ;;  %747 = vadd.xlane.f32.xlu0 %v746_v16 }
 0x2d4   : > { %v2264_v37 = vpop.eup %1543  ;;  %v1102_v43 = vpop.xlane.xlu1 %1101 }
 0x2d5   : > { %1553 = vpow2.f32 %v1140_v15  ;;  %v1120_v45 = vsub.f32 %v2166_v41, %v1102_v43  ;;  %v1121_v52 = vsub.f32 %v2168_v42, %v1102_v43  ;;  %v1160_v38 = vadd.f32 %v2264_v37, %v2262_v36 }
 0x2d6   : > { %1555 = vpow2.f32 %v1142_v34 }
 0x2d7   : > { %v2270_v39 = vpop.eup %1545  ;;  %v1144_v20 = vmul.f32 1.442695, %v1120_v45  ;;  %v1146_v55 = vmul.f32 1.442695, %v1121_v52  ;;  %1161 = vadd.xlane.f32.xlu1 %v1160_v38 }
 0x2d8   : > { %v2272_v32 = vpop.eup %1547  ;;  %v1105_v58 = vpop.xlane.xlu0 %1104 }
 0x2d9   : > { %1557 = vpow2.f32 %v1144_v20  ;;  %v1122_v59 = vsub.f32 %v2172_v44, %v1105_v58  ;;  %v1123_v61 = vsub.f32 %v2174_v19, %v1105_v58  ;;  %v1163_v41 = vadd.f32 %v2272_v32, %v2270_v39 }
 0x2da   : > { %1559 = vpow2.f32 %v1146_v55 }
 0x2db   : > { %v2278_v42 = vpop.eup %1549  ;;  %v1148_v23 = vmul.f32 1.442695, %v1122_v59  ;;  %v1150_v62 = vmul.f32 1.442695, %v1123_v61  ;;  %1164 = vadd.xlane.f32.xlu0 %v1163_v41 }
 0x2dc   : > { %v2280_v63 = vpop.eup %1551  ;;  %v1108_v1 = vpop.xlane.xlu1 %1107 }
 0x2dd   : > { %1561 = vpow2.f32 %v1148_v23  ;;  %v1124_v35 = vsub.f32 %v2178_v47, %v1108_v1  ;;  %v1125_v51 = vsub.f32 %v2180_v48, %v1108_v1  ;;  %v1166_v44 = vadd.f32 %v2280_v63, %v2278_v42 }
 0x2de   : > { %1563 = vpow2.f32 %v1150_v62 }
 0x2df   : > { %v2286_v19 = vpop.eup %1553  ;;  %v1152_v4 = vmul.f32 1.442695, %v1124_v35  ;;  %v1154_v50 = vmul.f32 1.442695, %v1125_v51  ;;  %1167 = vadd.xlane.f32.xlu1 %v1166_v44 }
 0x2e0   : > { %v2288_v2 = vpop.eup %1555  ;;  %v1111_v3 = vpop.xlane.xlu0 %1110 }
 0x2e1   : > { %1565 = vpow2.f32 %v1152_v4  ;;  %v1126_v5 = vsub.f32 %v2184_v53, %v1111_v3  ;;  %v1127_v6 = vsub.f32 %v2186_v54, %v1111_v3  ;;  %v1169_v47 = vadd.f32 %v2288_v2, %v2286_v19 }
 0x2e2   : > { %1567 = vpow2.f32 %v1154_v50 }
 0x2e3   : > { %v2294_v48 = vpop.eup %1557  ;;  %v1156_v28 = vmul.f32 1.442695, %v1126_v5  ;;  %v1158_v7 = vmul.f32 1.442695, %v1127_v6  ;;  %1170 = vadd.xlane.f32.xlu0 %v1169_v47 }
 0x2e4   : > { %v2296_v8 = vpop.eup %1559 }
 0x2e5   : > { %1569 = vpow2.f32 %v1156_v28  ;;  %v1172_v12 = vadd.f32 %v2296_v8, %v2294_v48 }
 0x2e6   : > { %1571 = vpow2.f32 %v1158_v7 }
 0x2e7   : > { %v2300_v11 = vpop.eup %1561  ;;  %1173 = vadd.xlane.f32.xlu1 %v1172_v12 }
 0x2e8   : > { %v2302_v53 = vpop.eup %1563 }
 0x2e9   : > { %v1175_v54 = vadd.f32 %v2302_v53, %v2300_v11 }
 0x2eb   : > { %v2306_v0 = vpop.eup %1565  ;;  %1176 = vadd.xlane.f32.xlu0 %v1175_v54 }
 0x2ec   : > { %v2308_v31 = vpop.eup %1567 }
 0x2ed   : > { %v1178_v56 = vadd.f32 %v2308_v31, %v2306_v0 }
 0x2ef   : > { %v2312_v14 = vpop.eup %1569  ;;  %1179 = vadd.xlane.f32.xlu1 %v1178_v56 }
 0x2f0   : > { %v2314_v25 = vpop.eup %1571 }
 0x2f1   : > { %v1181_v27 = vadd.f32 %v2314_v25, %v2312_v14 }
 0x2f3   : > { %1182 = vadd.xlane.f32.xlu0 %v1181_v27 }
 0x344   : > { %v727_v30 = vpop.xlane.xlu1 %726 }
 0x345   : > { %1573 = vrcp.f32 %v727_v30 }
 0x348   : > { %v730_v16 = vpop.xlane.xlu0 %729 }
 0x349   : > { %1575 = vrcp.f32 %v730_v16 }
 0x34c   : > { %v733_v15 = vpop.xlane.xlu1 %732 }
 0x34d   : > { %1577 = vrcp.f32 %v733_v15 }
 0x34f   : > { %v1574_v34 = vpop.eup %1573 }
 0x350   : > { %v757_v43 = vmul.f32 %v1574_v34, %v2198_v49  ;;  %v758_v45 = vmul.f32 %v1574_v34, %v2200_v10  ;;  %v736_v52 = vpop.xlane.xlu0 %735 }
 0x351   : > { %1579 = vrcp.f32 %v736_v52 }
 0x352   : > { %773 = vst [vmem:[%s2321_s10] sm:$0xff] %v757_v43  ;;  %774 = vst [vmem:[%s2321_s10 + $0x8] sm:$0xff] %v758_v45 }
 0x353   : > { %v1576_v38 = vpop.eup %1575 }
 0x354   : > { %v759_v20 = vmul.f32 %v1576_v38, %v2206_v13  ;;  %v760_v55 = vmul.f32 %v1576_v38, %v2208_v22  ;;  %v739_v49 = vpop.xlane.xlu1 %738 }
 0x355   : > { %1581 = vrcp.f32 %v739_v49 }
 0x356   : > { %775 = vst [vmem:[%s2321_s10 + $0x10] sm:$0xff] %v759_v20  ;;  %776 = vst [vmem:[%s2321_s10 + $0x18] sm:$0xff] %v760_v55 }
 0x357   : > { %v1578_v10 = vpop.eup %1577 }
 0x358   : > { %v761_v58 = vmul.f32 %v1578_v10, %v2214_v17  ;;  %v762_v59 = vmul.f32 %v1578_v10, %v2216_v40  ;;  %v742_v61 = vpop.xlane.xlu0 %741 }
 0x359   : > { %1583 = vrcp.f32 %v742_v61 }
 0x35a   : > { %777 = vst [vmem:[%s2321_s10 + $0x20] sm:$0xff] %v761_v58  ;;  %778 = vst [vmem:[%s2321_s10 + $0x28] sm:$0xff] %v762_v59 }
 0x35b   : > { %v1580_v13 = vpop.eup %1579 }
 0x35c   : > { %v763_v22 = vmul.f32 %v1580_v13, %v2222_v21  ;;  %v764_v41 = vmul.f32 %v1580_v13, %v2224_v57  ;;  %v745_v23 = vpop.xlane.xlu1 %744 }
 0x35d   : > { %1585 = vrcp.f32 %v745_v23 }
 0x35e   : > { %779 = vst [vmem:[%s2321_s10 + $0x30] sm:$0xff] %v763_v22  ;;  %780 = vst [vmem:[%s2321_s10 + $0x38] sm:$0xff] %v764_v41 }
 0x35f   : > { %v1582_v17 = vpop.eup %1581 }
 0x360   : > { %v765_v40 = vmul.f32 %v1582_v17, %v2230_v24  ;;  %v766_v62 = vmul.f32 %v1582_v17, %v2232_v46  ;;  %v748_v1 = vpop.xlane.xlu0 %747 }
 0x361   : > { %1587 = vrcp.f32 %v748_v1 }
 0x362   : > { %781 = vst [vmem:[%s2321_s10 + $0x40] sm:$0xff] %v765_v40  ;;  %782 = vst [vmem:[%s2321_s10 + $0x48] sm:$0xff] %v766_v62 }
 0x363   : > { %v1584_v21 = vpop.eup %1583 }
 0x364   : > { %v767_v57 = vmul.f32 %v1584_v21, %v2238_v26  ;;  %v768_v35 = vmul.f32 %v1584_v21, %v2240_v60  ;;  %v1162_v51 = vpop.xlane.xlu1 %1161 }
 0x365   : > { %1589 = vrcp.f32 %v1162_v51 }
 0x366   : > { %783 = vst [vmem:[%s2321_s10 + $0x50] sm:$0xff] %v767_v57  ;;  %784 = vst [vmem:[%s2321_s10 + $0x58] sm:$0xff] %v768_v35 }
 0x367   : > { %v1586_v24 = vpop.eup %1585 }
 0x368   : > { %v769_v46 = vmul.f32 %v1586_v24, %v2246_v29  ;;  %v770_v44 = vmul.f32 %v1586_v24, %v2248_v9  ;;  %v1165_v4 = vpop.xlane.xlu0 %1164 }
 0x369   : > { %1591 = vrcp.f32 %v1165_v4 }
 0x36a   : > { %785 = vst [vmem:[%s2321_s10 + $0x60] sm:$0xff] %v769_v46  ;;  %786 = vst [vmem:[%s2321_s10 + $0x68] sm:$0xff] %v770_v44 }
 0x36b   : > { %v1588_v26 = vpop.eup %1587 }
 0x36c   : > { %v771_v60 = vmul.f32 %v1588_v26, %v2254_v33  ;;  %v772_v50 = vmul.f32 %v1588_v26, %v2256_v18  ;;  %v1168_v3 = vpop.xlane.xlu1 %1167 }
 0x36d   : > { %1593 = vrcp.f32 %v1168_v3 }
 0x36e   : > { %787 = vst [vmem:[%s2321_s10 + $0x70] sm:$0xff] %v771_v60  ;;  %788 = vst [vmem:[%s2321_s10 + $0x78] sm:$0xff] %v772_v50 }
 0x36f   : > { %v1590_v29 = vpop.eup %1589 }
 0x370   : > { %v1192_v9 = vmul.f32 %v1590_v29, %v2262_v36  ;;  %v1193_v5 = vmul.f32 %v1590_v29, %v2264_v37  ;;  %v1171_v6 = vpop.xlane.xlu0 %1170 }
 0x371   : > { %1595 = vrcp.f32 %v1171_v6 }
 0x372   : > { %1380 = vst [vmem:[%s2321_s10 + $0x80] sm:$0xff] %v1192_v9  ;;  %1381 = vst [vmem:[%s2321_s10 + $0x88] sm:$0xff] %v1193_v5 }
 0x373   : > { %v1592_v33 = vpop.eup %1591 }
 0x374   : > { %v1194_v18 = vmul.f32 %v1592_v33, %v2270_v39  ;;  %v1195_v47 = vmul.f32 %v1592_v33, %v2272_v32  ;;  %v1174_v28 = vpop.xlane.xlu1 %1173 }
 0x375   : > { %1597 = vrcp.f32 %v1174_v28 }
 0x376   : > { %1382 = vst [vmem:[%s2321_s10 + $0x90] sm:$0xff] %v1194_v18  ;;  %1383 = vst [vmem:[%s2321_s10 + $0x98] sm:$0xff] %v1195_v47 }
 0x377   : > { %v1594_v36 = vpop.eup %1593 }
 0x378   : > { %v1196_v37 = vmul.f32 %v1594_v36, %v2278_v42  ;;  %v1197_v7 = vmul.f32 %v1594_v36, %v2280_v63  ;;  %v1177_v12 = vpop.xlane.xlu0 %1176 }
 0x379   : > { %1599 = vrcp.f32 %v1177_v12 }
 0x37a   : > { %1384 = vst [vmem:[%s2321_s10 + $0xa0] sm:$0xff] %v1196_v37  ;;  %1385 = vst [vmem:[%s2321_s10 + $0xa8] sm:$0xff] %v1197_v7 }
 0x37b   : > { %v1596_v39 = vpop.eup %1595 }
 0x37c   : > { %v1198_v32 = vmul.f32 %v1596_v39, %v2286_v19  ;;  %v1199_v54 = vmul.f32 %v1596_v39, %v2288_v2  ;;  %v1180_v56 = vpop.xlane.xlu1 %1179 }
 0x37d   : > { %1601 = vrcp.f32 %v1180_v56 }
 0x37e   : > { %1386 = vst [vmem:[%s2321_s10 + $0xb0] sm:$0xff] %v1198_v32  ;;  %1387 = vst [vmem:[%s2321_s10 + $0xb8] sm:$0xff] %v1199_v54 }
 0x37f   : > { %v1598_v42 = vpop.eup %1597 }
 0x380   : > { %v1200_v63 = vmul.f32 %v1598_v42, %v2294_v48  ;;  %v1201_v27 = vmul.f32 %v1598_v42, %v2296_v8  ;;  %v1183_v30 = vpop.xlane.xlu0 %1182 }
 0x381   : > { %1603 = vrcp.f32 %v1183_v30 }
 0x382   : > { %1388 = vst [vmem:[%s2321_s10 + $0xc0] sm:$0xff] %v1200_v63  ;;  %1389 = vst [vmem:[%s2321_s10 + $0xc8] sm:$0xff] %v1201_v27 }
 0x383   : > { %v1600_v19 = vpop.eup %1599 }
 0x384   : > { %v1202_v2 = vmul.f32 %v1600_v19, %v2300_v11  ;;  %v1203_v16 = vmul.f32 %v1600_v19, %v2302_v53 }
 0x386   : > { %1390 = vst [vmem:[%s2321_s10 + $0xd0] sm:$0xff] %v1202_v2  ;;  %1391 = vst [vmem:[%s2321_s10 + $0xd8] sm:$0xff] %v1203_v16 }
 0x387   : > { %v1602_v15 = vpop.eup %1601 }
 0x388   : > { %v1204_v48 = vmul.f32 %v1602_v15, %v2306_v0  ;;  %v1205_v8 = vmul.f32 %v1602_v15, %v2308_v31 }
 0x38a   : > { %1392 = vst [vmem:[%s2321_s10 + $0xe0] sm:$0xff] %v1204_v48  ;;  %1393 = vst [vmem:[%s2321_s10 + $0xe8] sm:$0xff] %v1205_v8 }
 0x38b   : > { %v1604_v34 = vpop.eup %1603 }
 0x38c   : > { %v1206_v11 = vmul.f32 %v1604_v34, %v2312_v14  ;;  %v1207_v53 = vmul.f32 %v1604_v34, %v2314_v25 }
 0x38e   : > { %1394 = vst [vmem:[%s2321_s10 + $0xf0] sm:$0xff] %v1206_v11  ;;  %1395 = vst [vmem:[%s2321_s10 + $0xf8] sm:$0xff] %v1207_v53 }
 0x38f   : > { %1648 = shalt.err (!%p1645_p3)
}
 0x390   : > { %s1649_s15 = scalar_lea.hbm %s2386_s25, 4096  ;;  %s1653_s9 = scalar_lea.hbm %s2440_s5, 12288 }
 0x391   : > { %p1650_p4 = scmp.ne.s32.totalorder %s2386_s25, %s1649_s15  ;;  %p1654_p2 = scmp.lt.u32.totalorder %s2386_s25, %s2440_s5 }
 0x392   : > { %p1655_p7 = scmp.lt.u32.totalorder %s1653_s9, %s1649_s15  ;;  %p1657_p10 = scmp.lt.u32.totalorder %s1649_s15, %s2386_s25 }
 0x393   : > { %p1651_p5 = pnand %p1650_p4, %p2446_p11 }
 0x394   : > { %p1656_p6 = por %p1655_p7, %p1654_p2 }
 0x395   : > { %p1652_p0 = pneg %p1651_p5 }
 0x396   : > { %p1658_p12 = por %p1657_p10, %p1656_p6 }
 0x398   : > { %p1659_p8 = pnand %p1658_p12, %p1652_p0 }
 0x39a   : > { %1662 = shalt.err (!%p1659_p8)
}
 0x39b   : > { %s1709_s26 = smov 256   ;;  %s1710_s16 = smov 16  }
 0x39c   : > { %1457 = dma.vmem_to_hbm [thread:$0]  (%p2446_p11), %s2388_s13, 4096, %s2386_s25, %s1226_s22, %s1709_s26, %s1709_s26, %s1710_s16  }
 0x39d PF: > { %p1468_p9 = scmp.ge.s32.totalorder %s1701_s21, 2  ;;  %s1255_s23 = sand.u32 1, %s1689_s18  }
 0x39e   : > { %p2447_p13 = scmp.ne.s32.totalorder %s2444_s30, 0  ;;  %s1256_s28 = scalar_lea.sflag [#allocation4], %s1255_s23 }
 0x3a0   : > { %p1464_p1 = pnand %p1468_p9, %p2447_p13 }
 0x3a2   : > { %1684 = dma.done.wait (!%p1464_p1), %s1256_s28, 4096  }
 0x3a3   : > { %1686 = vsyncadd (!%p1464_p1), %s1256_s28, 4294963200  ;;  %p18_p3 = scmp.ge.s32.totalorder %s1766_s24, 5   ;;  %s2448_s18 = smov %s1693_s19 }
 0x3a4   : > { %s2449_s19 = smov %s1697_s20  ;;  %s2450_s20 = smov %s1778_s27 }
 0x3a5   : > { %s2451_s21 = smov %s1766_s24  ;;  %20 = sbr.rel (!%p18_p3) target bundleno = 5 (0x5), region = 91 }
 0x3ac   :  { %1261 = vsyncpa [#allocation3], 1 }
 0x3ad   :  { %1263 = vsyncpa [#allocation3 + $0x1], 1 }
 0x3ae   :  { %1264 = vsyncpa [#allocation4], 1 }
 0x3af   :  { %1266 = vsyncpa [#allocation4 + $0x1], 1 }

</bundles_post_ra>
